<compile_context>
chip_gen: v7x
topology: tpu7x:2x2x1
jax: 0.10.0
libtpu: 0.0.40
codegen_flags: <defaults>
</compile_context>

<pallas_src>
import jax
import jax.numpy as jnp
from jax.experimental import pallas as pl
from jax.experimental.pallas import tpu as pltpu


def _round_up(x, m):
    return (x + m - 1) // m * m


def mlp_kernel(alpha_ref, beta_ref, w1a_ref, w1b_ref, b1_ref, w2_ref, b2_ref,
               o_ref):
    # alpha_ref/beta_ref: (TB, A)   w1a_ref/w1b_ref: (A, 2A)   b1_ref: (1, 2A)
    # w2_ref: (2A, A)               b2_ref: (1, A)             o_ref: (TB, A)
    a = alpha_ref[...]
    b = beta_ref[...]
    # Fused concat: cat([a, b], 1) @ w1 == a @ w1[:A, :] + b @ w1[A:, :]
    h = (jnp.dot(a, w1a_ref[...], preferred_element_type=jnp.float32)
         + jnp.dot(b, w1b_ref[...], preferred_element_type=jnp.float32)
         + b1_ref[...].astype(jnp.float32))
    h = jnp.maximum(h, 0.0)  # ReLU in f32 (bf16 stays a storage/MXU dtype only)
    y = (jnp.dot(h.astype(w2_ref.dtype), w2_ref[...],
                 preferred_element_type=jnp.float32)
         + b2_ref[...].astype(jnp.float32))
    o_ref[...] = y.astype(o_ref.dtype)


def prepare_params(w1, b1, w2, b2):
    """One-time parameter prep (NOT per forward call).

    Splits w1 along its input dim so the fused concat needs no in-kernel
    slicing, and forces biases to 2-D (1, N) row vectors.
    """
    two_a = w1.shape[0]
    assert w1.shape == (two_a, two_a) and two_a % 2 == 0, w1.shape
    A = two_a // 2
    if b1.ndim == 1:
        b1 = b1.reshape(1, -1)
    if b2.ndim == 1:
        b2 = b2.reshape(1, -1)
    assert b1.shape == (1, two_a), b1.shape
    assert w2.shape == (two_a, A), w2.shape
    assert b2.shape == (1, A), b2.shape
    return w1[:A, :], w1[A:, :], b1, w2, b2


def mlp_forward(alpha, beta, params, *, block_b=None,
                pipeline_vmem_budget_bytes=12 << 20):
    """Forward pass. `params` must come from prepare_params(w1, b1, w2, b2)."""
    w1a, w1b, b1, w2, b2 = params
    B, A = alpha.shape
    assert beta.shape == (B, A), (alpha.shape, beta.shape)
    two_a = 2 * A
    out_dtype = alpha.dtype

    in_item = jnp.dtype(alpha.dtype).itemsize
    out_item = jnp.dtype(out_dtype).itemsize
    # Sublane granularity of the batch-tile dim (8 for 32-bit, 16 for 16-bit).
    sub = 8 if (in_item >= 4 and out_item >= 4) else 16

    weight_bytes = sum(int(p.size) * p.dtype.itemsize
                       for p in (w1a, w1b, b1, w2, b2))

    if block_b is None:
        # Size the batch tile from the VMEM budget, not a fixed constant.
        # Double-buffered pipelined bytes per batch row: alpha + beta + out.
        row_bytes = 2 * (2 * A * in_item + A * out_item)
        budget = max(pipeline_vmem_budget_bytes - 2 * weight_bytes, 1 << 20)
        block_b = max(budget // row_bytes, sub)
        block_b = min(block_b, 32768)  # beyond this, per-step overhead is noise

    tb = _round_up(min(block_b, B), sub)
    # Keep >= 2 grid steps when the batch allows so both v7x TensorCores get
    # work from the "parallel" batch axis.
    if B > sub:
        tb = min(tb, _round_up(pl.cdiv(B, 2), sub))
    tb = max(tb, sub)
    num_tiles = pl.cdiv(B, tb)

    # Only override the conservative scoped-VMEM default when actually needed
    # (caller passed a huge block_b); always stays under v7x's 64 MiB physical.
    needed_vmem = (2 * tb * (2 * A * in_item + A * out_item)
                   + 2 * weight_bytes + (2 << 20))
    vmem_limit = None
    if needed_vmem > (14 << 20):
        vmem_limit = min(needed_vmem, 64 << 20)

    flops = 2 * B * two_a * two_a + 2 * B * two_a * A
    bytes_accessed = 2 * B * A * in_item + B * A * out_item + weight_bytes
    cost = pl.CostEstimate(flops=flops, transcendentals=0,
                           bytes_accessed=bytes_accessed)

    out = pl.pallas_call(
        mlp_kernel,
        out_shape=jax.ShapeDtypeStruct((B, A), out_dtype),
        grid_spec=pltpu.PrefetchScalarGridSpec(
            num_scalar_prefetch=0,
            grid=(num_tiles,),
            in_specs=[
                pl.BlockSpec((tb, A), lambda i: (i, 0)),        # alpha tile
                pl.BlockSpec((tb, A), lambda i: (i, 0)),        # beta tile
                pl.BlockSpec((A, two_a), lambda i: (0, 0)),     # w1a (resident)
                pl.BlockSpec((A, two_a), lambda i: (0, 0)),     # w1b (resident)
                pl.BlockSpec((1, two_a), lambda i: (0, 0)),     # b1  (resident)
                pl.BlockSpec((two_a, A), lambda i: (0, 0)),     # w2  (resident)
                pl.BlockSpec((1, A), lambda i: (0, 0)),         # b2  (resident)
            ],
            out_specs=pl.BlockSpec((tb, A), lambda i: (i, 0)),
        ),
        compiler_params=pltpu.CompilerParams(
            dimension_semantics=("parallel",),  # batch tiles shard across TCs
            vmem_limit_bytes=vmem_limit,
        ),
        cost_estimate=cost,
    )(alpha, beta, w1a, w1b, b1, w2, b2)
    return out


def init_params(key, action_length, dtype=jnp.float32):
    """Deterministic PyTorch-Linear-style init (uniform +/- 1/sqrt(fan_in))."""
    in1 = 2 * action_length
    out1 = 2 * action_length
    in2 = 2 * action_length
    out2 = action_length
    k1, k2, k3, k4 = jax.random.split(key, 4)
    lim1 = 1.0 / jnp.sqrt(in1)
    lim2 = 1.0 / jnp.sqrt(in2)
    # Stored as (in, out): y = x @ W + b
    w1 = jax.random.uniform(k1, (in1, out1), dtype, -lim1, lim1)
    b1 = jax.random.uniform(k2, (1, out1), dtype, -lim1, lim1)
    w2 = jax.random.uniform(k3, (in2, out2), dtype, -lim2, lim2)
    b2 = jax.random.uniform(k4, (1, out2), dtype, -lim2, lim2)
    return w1, b1, w2, b2


if __name__ == "__main__":
    action_length = 16
    batch = 20  # not a tile multiple -> exercises the ragged last block

    key = jax.random.PRNGKey(0)
    kp, ka, kb = jax.random.split(key, 3)
    w1, b1, w2, b2 = init_params(kp, action_length)
    params = prepare_params(w1, b1, w2, b2)  # one-time prep

    alpha = jax.random.normal(ka, (batch, action_length), jnp.float32)
    beta = jax.random.normal(kb, (batch, action_length), jnp.float32)

    out = jax.block_until_ready(mlp_forward(alpha, beta, params))

    # Reference check in plain JAX (same math as the PyTorch module).
    x = jnp.concatenate((alpha, beta), axis=1)
    ref = jnp.maximum(x @ w1 + b1, 0.0) @ w2 + b2
    assert out.shape == (batch, action_length)
    assert out.dtype == alpha.dtype
    assert jnp.allclose(out, ref, atol=1e-5, rtol=1e-5)

    # bf16 storage/DMA path (halves input+output HBM bytes on v6e/v7x; safe on
    # v5e since VPU work and accumulation stay f32 in-kernel). Looser tolerance
    # reflects bf16 quantization, not a correctness issue.
    bf16 = jnp.bfloat16
    params_bf16 = tuple(p.astype(bf16) for p in params)
    out_bf16 = jax.block_until_ready(
        mlp_forward(alpha.astype(bf16), beta.astype(bf16), params_bf16))
    assert out_bf16.shape == (batch, action_length)
    assert jnp.allclose(out_bf16.astype(jnp.float32), ref, atol=1e-1, rtol=5e-2)

    print("KERNEL_OK")
</pallas_src>

<mosaic_0001>
module attributes {stable_mosaic.version = 11 : i64} {
  func.func @mlp_kernel(%arg0: i32, %arg1: memref<16x16xf32, #tpu.memory_space<vmem>>, %arg2: memref<16x16xf32, #tpu.memory_space<vmem>>, %arg3: memref<16x32xf32, #tpu.memory_space<vmem>>, %arg4: memref<16x32xf32, #tpu.memory_space<vmem>>, %arg5: memref<1x32xf32, #tpu.memory_space<vmem>>, %arg6: memref<32x16xf32, #tpu.memory_space<vmem>>, %arg7: memref<1x16xf32, #tpu.memory_space<vmem>>, %arg8: memref<16x16xf32, #tpu.memory_space<vmem>>) attributes {dimension_semantics = [#tpu.dimension_semantics<parallel>], iteration_bounds = array<i64: 2>, scalar_prefetch = 0 : i64, scratch_operands = 0 : i64, tpu.core_type = #tpu.core_type<tc>, window_params = [{transform_indices = @transform_0, window_bounds = array<i64: 16, 16>}, {transform_indices = @transform_1, window_bounds = array<i64: 16, 16>}, {pipeline_mode = #tpu.pipeline_mode<synchronous>, transform_indices = @transform_2, window_bounds = array<i64: 16, 32>}, {pipeline_mode = #tpu.pipeline_mode<synchronous>, transform_indices = @transform_3, window_bounds = array<i64: 16, 32>}, {pipeline_mode = #tpu.pipeline_mode<synchronous>, transform_indices = @transform_4, window_bounds = array<i64: 1, 32>}, {pipeline_mode = #tpu.pipeline_mode<synchronous>, transform_indices = @transform_5, window_bounds = array<i64: 32, 16>}, {pipeline_mode = #tpu.pipeline_mode<synchronous>, transform_indices = @transform_6, window_bounds = array<i64: 1, 16>}, {transform_indices = @transform_7, window_bounds = array<i64: 16, 16>}]} {
    %c0 = arith.constant 0 : index
    %c0_0 = arith.constant 0 : index
    %0 = vector.load %arg1[%c0, %c0_0] : memref<16x16xf32, #tpu.memory_space<vmem>>, vector<16x16xf32>
    %c0_1 = arith.constant 0 : index
    %c0_2 = arith.constant 0 : index
    %1 = vector.load %arg2[%c0_1, %c0_2] : memref<16x16xf32, #tpu.memory_space<vmem>>, vector<16x16xf32>
    %c0_3 = arith.constant 0 : index
    %c0_4 = arith.constant 0 : index
    %2 = vector.load %arg3[%c0_3, %c0_4] : memref<16x32xf32, #tpu.memory_space<vmem>>, vector<16x32xf32>
    %cst = arith.constant dense<0.000000e+00> : vector<16x32xf32>
    %3 = tpu.matmul %0, %2, %cst {dimension_numbers = #tpu.dot_dimension_numbers<[1], [0], [0], [1], [0, 0, 1, 1], [], []>} : vector<16x16xf32>, vector<16x32xf32>, vector<16x32xf32> -> vector<16x32xf32>
    %c0_5 = arith.constant 0 : index
    %c0_6 = arith.constant 0 : index
    %4 = vector.load %arg4[%c0_5, %c0_6] : memref<16x32xf32, #tpu.memory_space<vmem>>, vector<16x32xf32>
    %cst_7 = arith.constant dense<0.000000e+00> : vector<16x32xf32>
    %5 = tpu.matmul %1, %4, %cst_7 {dimension_numbers = #tpu.dot_dimension_numbers<[1], [0], [0], [1], [0, 0, 1, 1], [], []>} : vector<16x16xf32>, vector<16x32xf32>, vector<16x32xf32> -> vector<16x32xf32>
    %6 = arith.addf %3, %5 : vector<16x32xf32>
    %c0_8 = arith.constant 0 : index
    %c0_9 = arith.constant 0 : index
    %7 = vector.load %arg5[%c0_8, %c0_9] : memref<1x32xf32, #tpu.memory_space<vmem>>, vector<1x32xf32>
    %8 = vector.broadcast %7 : vector<1x32xf32> to vector<16x32xf32>
    %9 = arith.addf %6, %8 : vector<16x32xf32>
    %cst_10 = arith.constant 0.000000e+00 : f32
    %10 = vector.broadcast %cst_10 : f32 to vector<16x32xf32>
    %11 = arith.maximumf %9, %10 : vector<16x32xf32>
    %c0_11 = arith.constant 0 : index
    %c0_12 = arith.constant 0 : index
    %12 = vector.load %arg6[%c0_11, %c0_12] : memref<32x16xf32, #tpu.memory_space<vmem>>, vector<32x16xf32>
    %cst_13 = arith.constant dense<0.000000e+00> : vector<16x16xf32>
    %13 = tpu.matmul %11, %12, %cst_13 {dimension_numbers = #tpu.dot_dimension_numbers<[1], [0], [0], [1], [0, 0, 1, 1], [], []>} : vector<16x32xf32>, vector<32x16xf32>, vector<16x16xf32> -> vector<16x16xf32>
    %c0_14 = arith.constant 0 : index
    %c0_15 = arith.constant 0 : index
    %14 = vector.load %arg7[%c0_14, %c0_15] : memref<1x16xf32, #tpu.memory_space<vmem>>, vector<1x16xf32>
    %15 = vector.broadcast %14 : vector<1x16xf32> to vector<16x16xf32>
    %16 = arith.addf %13, %15 : vector<16x16xf32>
    %c0_16 = arith.constant 0 : index
    %c0_17 = arith.constant 0 : index
    %17 = vector.load %arg8[%c0_16, %c0_17] : memref<16x16xf32, #tpu.memory_space<vmem>>, vector<16x16xf32>
    tpu.vector_store %arg8[%c0_16, %c0_17], %16 {strides = array<i32>} : memref<16x16xf32, #tpu.memory_space<vmem>>, vector<16x16xf32>,
    return
  }
  func.func @transform_0(%arg0: i32) -> (i32, i32) {
    %c0_i32 = arith.constant 0 : i32
    %c0_i32_0 = arith.constant 0 : i32
    return %arg0, %c0_i32 : i32, i32
  }
  func.func @transform_1(%arg0: i32) -> (i32, i32) {
    %c0_i32 = arith.constant 0 : i32
    %c0_i32_0 = arith.constant 0 : i32
    return %arg0, %c0_i32 : i32, i32
  }
  func.func @transform_2(%arg0: i32) -> (i32, i32) {
    %c0_i32 = arith.constant 0 : i32
    %c0_i32_0 = arith.constant 0 : i32
    %c0_i32_1 = arith.constant 0 : i32
    return %c0_i32, %c0_i32_0 : i32, i32
  }
  func.func @transform_3(%arg0: i32) -> (i32, i32) {
    %c0_i32 = arith.constant 0 : i32
    %c0_i32_0 = arith.constant 0 : i32
    %c0_i32_1 = arith.constant 0 : i32
    return %c0_i32, %c0_i32_0 : i32, i32
  }
  func.func @transform_4(%arg0: i32) -> (i32, i32) {
    %c0_i32 = arith.constant 0 : i32
    %c0_i32_0 = arith.constant 0 : i32
    %c0_i32_1 = arith.constant 0 : i32
    return %c0_i32, %c0_i32_0 : i32, i32
  }
  func.func @transform_5(%arg0: i32) -> (i32, i32) {
    %c0_i32 = arith.constant 0 : i32
    %c0_i32_0 = arith.constant 0 : i32
    %c0_i32_1 = arith.constant 0 : i32
    return %c0_i32, %c0_i32_0 : i32, i32
  }
  func.func @transform_6(%arg0: i32) -> (i32, i32) {
    %c0_i32 = arith.constant 0 : i32
    %c0_i32_0 = arith.constant 0 : i32
    %c0_i32_1 = arith.constant 0 : i32
    return %c0_i32, %c0_i32_0 : i32, i32
  }
  func.func @transform_7(%arg0: i32) -> (i32, i32) {
    %c0_i32 = arith.constant 0 : i32
    %c0_i32_0 = arith.constant 0 : i32
    return %arg0, %c0_i32 : i32, i32
  }
}

</mosaic_0001>

<bundles_post_ra>
// kernel: tpu_custom_call.1
= control target key start
LH: loop header
LB: loop body
LE: loop exit
PB: predicated region body
PF: predicated region fallthrough
CT: control target
= control target key end

     0   :  { %s1160_s24 = smov 0   ;;  %s1162_s25 = smov 0   ;;  %s1282_s0 = inlined_call_operand.vmem [shape: f32[20,16], index: 0, kind: input, shape index: {}]   ;;  %s1283_s1 = inlined_call_operand.vmem [shape: f32[20,16], index: 1, kind: input, shape index: {}]   ;;  %s1284_s2 = inlined_call_operand.vmem [shape: f32[16,32], index: 2, kind: input, shape index: {}]   ;;  %s1285_s3 = inlined_call_operand.vmem [shape: f32[16,32], index: 3, kind: input, shape index: {}]   ;;  %s1286_s4 = inlined_call_operand.vmem [shape: f32[1,32], index: 4, kind: input, shape index: {}]   ;;  %s1287_s5 = inlined_call_operand.vmem [shape: f32[32,16], index: 5, kind: input, shape index: {}]   ;;  %s1288_s6 = inlined_call_operand.vmem [shape: f32[1,16], index: 6, kind: input, shape index: {}]   ;;  %s1289_s7 = inlined_call_operand.vmem [shape: f32[20,16], index: 7, kind: output, shape index: {}]  }
   0x1   :  { %s1164_s26 = smov 0  }
   0x2 LB: > { %s1173_s27 = sadd.s32 4294967295, %s1086_s26   ;;  %s1175_s28 = sadd.s32 1, %s1086_s26   ;;  %s1086_s26 = sphi %s1164_s26, %s1293_s26   ;;  %s1082_s25 = sphi %s1162_s25, %s1292_s25   ;;  %s1078_s24 = sphi %s1160_s24, %s1291_s24  }
   0x3   : > { %s178_s29 = ssub.s32 %s1086_s26, %s1175_s28  ;;  %s181_s30 = sadd.s32 1, %s1082_s25 }
   0x4   : > { %p179_p0 = scmp.eq.s32.totalorder %s178_s29, 0  ;;  %p191_p1 = scmp.ne.s32.totalorder %s1082_s25, %s1078_s24 }
   0x5   : > { %p192_p2 = scmp.eq.s32.totalorder %s1173_s27, 1  ;;  %p853_p3 = scmp.ge.s32.totalorder %s1086_s26, 1 }
   0x6   : > { %s1183_s8 = scalar_select %p179_p0, %s1082_s25, %s181_s30  }
   0x7   : > { %p1185_p4 = por %p192_p2, %p191_p1  ;;  %p265_p5 = scmp.lt.s32.totalorder %s1086_s26, 3 }
   0x9   : > { %p266_p6 = pnand %p853_p3, %p265_p5 }
   0xa   : > { %v348_v0 = vld [vmem:[%s1285_s3] sm:$0xff] (!%p266_p6)  ;;  %v349_v1 = vld [vmem:[%s1285_s3 + $0x8] sm:$0xff] (!%p266_p6)  ;;  %s1196_s14 = sshll.u32 (!%p266_p6), %s1173_s27, 1  ;;  %vm350_vm0 = vcmask (!%p266_p6), 130048   ;;  %v526_v13 = vld [vmem:[%s1287_s5 + $0x10] sm:$0xff] (!%p266_p6)  ;;  %vm535_vm1 = vcmask (!%p266_p6), 261120  }
   0xb   : > { %269 = sbr.rel (%p266_p6) target bundleno = 515 (0x203), region = 48  ;;  %v346_v2 = vld [vmem:[%s1284_s2] sm:$0xff] (!%p266_p6)  ;;  %v926_v3 = vpack.c.bf16 (!%p266_p6), %v349_v1, %v348_v0  ;;  %p314_p7 = scmp.lt.s32.totalorder (!%p266_p6), %s1196_s14, 2  ;;  %v347_v4 = vld [vmem:[%s1284_s2 + $0x8] sm:$0xff] (!%p266_p6)  ;;  %v527_v14 = vld [vmem:[%s1287_s5 + $0x18] sm:$0xff] (!%p266_p6) }
   0xc   : > { %v524_v5 = vld [vmem:[%s1287_s5] sm:$0xff] (!%p266_p6)  ;;  %v525_v6 = vld [vmem:[%s1287_s5 + $0x8] sm:$0xff] (!%p266_p6)  ;;  %v930_v7 = vpack.c.bf16 (!%p266_p6), %v347_v4, %v346_v2  ;;  %v938_v15 = vpack.c.bf16 (!%p266_p6), %v527_v14, %v526_v13  ;;  %s306_s21 = sand.u32 (!%p266_p6), 1, %s1078_s24  }
   0xd   : > { %v934_v8 = vpack.c.bf16 (!%p266_p6), %v525_v6, %v524_v5  ;;  %927 = vmatprep.subr.bf16.mxu0 (!%p266_p6), %v926_v3  ;;  %v863_v16 = vld [vmem:[%s1286_s4] ss:$0 sm:$0xff] (!%p266_p6)  ;;  %s854_s22 = sshll.u32 (!%p266_p6), %s306_s21, 4 }
   0xe   : > { %929 = vmatpush3.bf16.msra.mxu0 (!%p266_p6), %v926_v3  ;;  %v864_v23 = vld [vmem:[%s1288_s6] ss:$0 sm:$0xff] (!%p266_p6)  ;;  %s1235_s29 = scalar_lea.vmem (!%p266_p6), [#allocation2], %s854_s22  }
   0xf   : > { %935 = vmatprep.subr.bf16.mxu1 (!%p266_p6), %v934_v8  ;;  %931 = vmatprep.subr.bf16.mxu0 (!%p266_p6), %v930_v7 }
  0x10   : > { %937 = vmatpush3.bf16.msra.mxu1 (!%p266_p6), %v934_v8 }
  0x11   : > { %939 = vmatprep.subr.bf16.mxu1 (!%p266_p6), %v938_v15 }
  0x12   : > { %s315_s23 = scalar_select %p314_p7, %s1196_s14, 2 }
  0x13   : > { %s627_s24 = ssub.s32 (%p1185_p4), 3, %s1196_s14  ;;  %s884_s30 = sshll.u32 (%p1185_p4), %s1173_s27, 4 }
  0x14   : > { %s856_s26 = sshll.u32 %s315_s23, 3  ;;  %941 = vmatpush3.bf16.msra.mxu1 %v938_v15  ;;  %p628_p8 = scmp.lt.s32.totalorder (%p1185_p4), %s627_s24, 2 }
  0x15   : > { %s317_s10 = scalar_lea.vmem %s1282_s0, %s856_s26  ;;  %s331_s13 = scalar_lea.vmem %s1283_s1, %s856_s26 }
  0x16   : > { %v344_v9 = vld [vmem:[%s331_s13] sm:$0xff]  ;;  %v345_v10 = vld [vmem:[%s331_s13 + $0x8] sm:$0xff]  ;;  %s1248_s12 = scalar_lea.vmem (%p1185_p4), %s1289_s7, %s884_s30  }
  0x17   : > { %905 = vmatprep.mubr.msk.f32.mxu0 %vm350_vm0, %v344_v9  ;;  %v342_v11 = vld [vmem:[%s317_s10] sm:$0xff]  ;;  %v343_v12 = vld [vmem:[%s317_s10 + $0x8] sm:$0xff] }
  0x18   : > { %906 = vmatmul.mubr.msk.f32.vlgmr.msra.gmra.mrb[0].mxu0 %vm350_vm0, %v345_v10 }
  0x19   : > { %933 = vmatpush3.bf16.msra.mxu0 %v930_v7  ;;  %912 = vmatprep.mubr.msk.f32.mxu0 %vm350_vm0, %v342_v11 }
  0x20   : > { %913 = vmatmul.mubr.msk.f32.vlgmr.msra.gmra.mrb[0].mxu0 %vm350_vm0, %v343_v12 }
  0xf3   : > { %v914_v17 = vpop.f32.mrb[0].mxu0 }
  0xf4   : > { %v521_v18 = vadd.f32 %v914_v17, %v863_v16  ;;  %v504_v19 = vpop.f32.mrb[1].mxu0 }
  0xf5   : > { %v520_v20 = vadd.f32 %v863_v16, %v504_v19 }
  0xf6   : > { %v523_v22 = vmax.f32 %v521_v18, 0.0 }
  0xf7   : > { %v522_v21 = vmax.f32 %v520_v20, 0.0 }
  0xf9   : > { %923 = vmatprep.mubr.msk.f32.mxu1 %vm535_vm1, %v522_v21 }
  0xfa   : > { %924 = vmatmul.mubr.msk.f32.vlgmr.msra.gmra.mrb[0].mxu1 %vm535_vm1, %v523_v22 }
 0x1cb   : > { %625 = sbr.rel (!%p1185_p4) target bundleno = 515 (0x203), region = 52 }
 0x1cd   : > { %v925_v24 = vpop.f32.mrb[0].mxu1 }
 0x1ce   : > { %v614_v25 = vadd.f32 %v925_v24, %v864_v23  ;;  %v608_v26 = vpop.f32.mrb[1].mxu1 }
 0x1cf   : > { %v609_v27 = vadd.f32 %v864_v23, %v608_v26 }
 0x1d0   : > { %618 = vst.msk [vmem:[%s1235_s29 + $0x8] sm:$0xff] %vm350_vm0, %v614_v25 }
 0x1d1   : > { %617 = vst.msk [vmem:[%s1235_s29] sm:$0xff] %vm350_vm0, %v609_v27 }
 0x1d2   : > { %s1295_s24 = smov (!%p628_p8, %s627_s24), 2 }
 0x1d3   : > { %s869_s13 = sshll.u32 %s1295_s24, 7 }
 0x1d4   : > { %p872_p9 = scmp.eq.s32.totalorder %s869_s13, 0 }
 0x1d5   : > { %s1254_s15 = sshrl.u32 (!%p872_p9), %s1295_s24, 1 }
 0x1d6   : > { %636 = sbr.rel (%p872_p9) target bundleno = 515 (0x203), region = 56  ;;  %p873_p10 = scmp.le.s32.totalorder (!%p872_p9), %s1254_s15, 0 }
 0x1dd   : > { %800 = sbr.rel (%p873_p10) target bundleno = 494 (0x1ee), region = 135  ;;  %s1088_s27 = smov (!%p873_p10), %s1248_s12  }
 0x1de   : > { %s1092_s9 = smov (!%p873_p10), %s1235_s29   ;;  %s1096_s14 = smov (!%p873_p10), 0  }
 0x1df   : > { %s1100_s16 = smov (!%p873_p10), 0  }
 0x1e4 LB: >> { %v700_v28 = vld [vmem:[%s1094_s9] sm:$0xff]  ;;  %v702_v29 = vld [vmem:[%s1094_s9 + $0x8] sm:$0xff]  ;;  %s704_s17 = sadd.s32 1, %s1098_s14  ;;  %s694_s16 = sadd.s32 1, %s1102_s16   ;;  %s1102_s16 = sphi %s1100_s16, %s694_s16   ;;  %s1098_s14 = sphi %s1096_s14, %s1097_s14   ;;  %s1094_s9 = sphi %s1092_s9, %s709_s9   ;;  %s1090_s27 = sphi %s1088_s27, %s710_s27  }
 0x1e5   : >> { %701 = vst [vmem:[%s1090_s27] sm:$0xff] %v700_v28  ;;  %703 = vst [vmem:[%s1090_s27 + $0x8] sm:$0xff] %v702_v29  ;;  %p705_p11 = scmp.ge.s32.totalorder %s704_s17, %s1254_s15  ;;  %p693_p12 = scmp.ge.s32.totalorder %s694_s16, %s1254_s15 }
 0x1e7   : >> { %s1297_s17 = smov (%p705_p11, %s704_s17), 0  ;;  %696 = sbr.rel (!%p693_p12) target bundleno = 484 (0x1e4), region = 141 }
 0x1e8   : >> { %s874_s18 = sshll.u32 %s1297_s17, 4  ;;  %s1097_s14 = smov %s1297_s17  }
 0x1e9   : >> { %s709_s9 = scalar_lea.vmem %s1235_s29, %s874_s18 [#allocation2]   ;;  %s710_s27 = scalar_lea.vmem %s1248_s12, %s874_s18  }
 0x1ee PF: > { %s1264_s19 = sand.u32 1, %s1295_s24   ;;  %s885_s20 = sshll.u32 %s1254_s15, 4 }
 0x1ef   : > { %s715_s21 = scalar_lea.vmem %s1235_s29, %s885_s20 [#allocation2]   ;;  %s717_s22 = scalar_lea.vmem %s1248_s12, %s885_s20  }
 0x1f0   : > { %p879_p13 = scmp.le.s32.totalorder %s1264_s19, 0 }
 0x1f1   : > { %s1104_s23 = smov (!%p879_p13), %s717_s22   ;;  %s1108_s26 = smov (!%p879_p13), %s715_s21  }
 0x1f2   : > { %814 = sbr.rel (%p879_p13) target bundleno = 515 (0x203), region = 146  ;;  %s1112_s30 = smov (!%p879_p13), 0  }
 0x1f3   : > { %s1116_s10 = smov (!%p879_p13), 0  }
 0x1f9 LB: >> { %v727_v30 = vld [vmem:[%s1110_s26] sm:$0xff]  ;;  %s729_s24 = sadd.s32 1, %s1114_s30  ;;  %s721_s10 = sadd.s32 1, %s1118_s10   ;;  %s1118_s10 = sphi %s1116_s10, %s721_s10   ;;  %s1114_s30 = sphi %s1112_s30, %s1113_s30   ;;  %s1110_s26 = sphi %s1108_s26, %s734_s26   ;;  %s1106_s23 = sphi %s1104_s23, %s735_s23  }
 0x1fa   : >> { %728 = vst [vmem:[%s1106_s23] sm:$0xff] %v727_v30  ;;  %p730_p0 = scmp.ge.s32.totalorder %s729_s24, %s1264_s19  ;;  %p720_p1 = scmp.ge.s32.totalorder %s721_s10, %s1264_s19 }
 0x1fc   : >> { %s1299_s24 = smov (%p730_p0, %s729_s24), 0  ;;  %723 = sbr.rel (!%p720_p1) target bundleno = 505 (0x1f9), region = 152 }
 0x1fd   : >> { %s880_s29 = sshll.u32 %s1299_s24, 3  ;;  %s1113_s30 = smov %s1299_s24  }
 0x1fe   : >> { %s734_s26 = scalar_lea.vmem %s715_s21, %s880_s29 [#allocation2]   ;;  %s735_s23 = scalar_lea.vmem %s717_s22, %s880_s29  }
 0x203 PF: > { %p14_p2 = scmp.ge.s32.totalorder %s1175_s28, 4   ;;  %s1291_s24 = smov %s1082_s25 }
 0x204   : > { %s1292_s25 = smov %s1183_s8  ;;  %s1293_s26 = smov %s1175_s28 }
 0x205   :  { %16 = sbr.rel (!%p14_p2) target bundleno = 2 (0x2), region = 163 }

</bundles_post_ra>
